<compile_context>
chip_gen: v5e
topology: v5e:2x2
jax: 0.10.0
libtpu: 0.0.40
codegen_flags: <defaults>
</compile_context>

<pallas_src>
import jax
import jax.numpy as jnp
from jax.experimental import pallas as pl
from jax.experimental.pallas import tpu as pltpu

_LANE = 128


def _round_up(n: int, m: int) -> int:
    return -(-n // m) * m


def _choose_batch_tile(B: int, live_row_bytes: int,
                       budget_bytes: int = 20 << 20, max_tb: int = 4096) -> int:
    """Pick the batch tile TB.

    Big enough to amortize per-grid-step overhead and approach the HBM
    roofline (MiB-sized slabs), small enough that double-buffered blocks plus
    f32 intermediates stay well under v7x's 64 MiB physical VMEM, multiple of
    8 sublanes, and (when B allows) >= 2 grid steps so both v7x TensorCores
    get work through the 'parallel' grid axis.
    """
    tb = int(budget_bytes // max(live_row_bytes, 1))
    tb = max(8, min(tb, max_tb))
    tb -= tb % 8
    if tb * 2 > B > 8:                       # keep at least 2 grid steps
        tb = _round_up(_round_up(B, 2) // 2, 8)
    tb = min(tb, _round_up(B, 8))
    return max(tb, 8)


def _vmem_limit_bytes(live_block_bytes: int, const_bytes: int = 0) -> int:
    """Scoped-VMEM budget: footprint * 1.5 + constants + margin, in [16, 64] MiB."""
    est = int(live_block_bytes * 1.5) + const_bytes + (2 << 20)
    return int(min(64 << 20, max(est, 16 << 20)))


# --------------------------------------------------------------------------- #
# Kernels
# --------------------------------------------------------------------------- #
def _mean_pool_mlp_kernel(x_ref, mask_ref, wm_ref, bm_ref, o_ref):
    # x_ref:    (TB*G, D)   -- folded in the wrapper (no in-kernel x relayout)
    # mask_ref: (TB, G, 1)  -- G on sublanes: lane broadcast, no vxpose
    # wm_ref:   (D, Dop), bm_ref: (1, Dop), o_ref: (TB, Dop); Dop % 128 == 0
    TB, G, _ = mask_ref.shape
    Dop = o_ref.shape[-1]

    # Native-dtype MXU operands; f32 accumulation via preferred_element_type.
    h = jnp.dot(x_ref[...], wm_ref[...], preferred_element_type=jnp.float32)
    h = jnp.tanh(jnp.maximum(h + bm_ref[...].astype(jnp.float32), 0.0))
    # (TB*G, Dop) -> (TB, G, Dop): layout-preserving when Dop % 128 == 0 and
    # G is a multiple of 8 (G=8 here), so no relayout copy.
    h = h.reshape(TB, G, Dop)

    w = jnp.exp(mask_ref[...].astype(jnp.float32))           # (TB, G, 1)
    num = jnp.sum(h * w, axis=1)                             # (TB, Dop)
    den = jnp.sum(w, axis=1)                                 # (TB, 1)
    # Division -> EUP approximate reciprocal (otherwise-idle slot).
    o_ref[...] = (num * pl.reciprocal(den, approx=True)).astype(o_ref.dtype)


def _mean_pool_kernel(x_ref, mask_ref, o_ref):
    # x_ref: (TB, G, Dp), mask_ref: (TB, G, 1), o_ref: (TB, Dp); Dp % 128 == 0
    w = jnp.exp(mask_ref[...].astype(jnp.float32))           # (TB, G, 1)
    num = jnp.sum(x_ref[...] * w, axis=1)                    # (TB, Dp) f32
    den = jnp.sum(w, axis=1)                                 # (TB, 1)
    o_ref[...] = (num * pl.reciprocal(den, approx=True)).astype(o_ref.dtype)


# --------------------------------------------------------------------------- #
# Wrapper
# --------------------------------------------------------------------------- #
def mean_pool_aggregator(x, mask, params, mlp=False):
    """Pallas forward pass.

    x: [B, G, D] float; mask: [B, G] with -inf (absent) / 0 (present) or None.
    Returns [B, Do] if mlp else [B, D].
    """
    B, G, D = x.shape
    itemsize = jnp.dtype(x.dtype).itemsize

    if mask is None:
        mask = jnp.zeros((B, G), x.dtype)          # exp(0)=1 -> plain mean
    mask = mask.astype(x.dtype)

    if mlp:
        wm, bm = params["w_mlp"], params["b_mlp"]  # [D, Do], [Do]
        Do = wm.shape[1]
        Dop = _round_up(Do, _LANE)                 # lane-dense output stores
        if Dop != Do:
            wm = jnp.pad(wm, ((0, 0), (0, Dop - Do)))
            bm = jnp.pad(bm, (0, Dop - Do))
        bm = bm.reshape(1, Dop).astype(wm.dtype)
        w_itemsize = jnp.dtype(wm.dtype).itemsize

        # Per batch row: double-buffered streams (x, mask, out) + f32 temporaries.
        live_row = 2 * (G * D + G + Dop) * itemsize + 3 * G * Dop * 4
        TB = _choose_batch_tile(B, live_row)
        Bp = _round_up(B, TB)
        if Bp != B:
            x = jnp.pad(x, ((0, Bp - B), (0, 0), (0, 0)))
            mask = jnp.pad(mask, ((0, Bp - B), (0, 0)))    # 0-mask -> finite denom
        # Fold (B, G, D) -> (B*G, D) in the wrapper: free contiguous reshape,
        # tall MXU M = TB*G per step, no per-step relayout in the kernel.
        x2 = x.reshape(Bp * G, D)
        mask3 = mask[..., None]                            # keep G on sublanes

        grid = (Bp // TB,)
        cost = pl.CostEstimate(
            flops=int(2 * Bp * G * D * Dop + 2 * Bp * G * Dop),
            transcendentals=int(Bp * G * Dop + Bp * G + Bp),
            bytes_accessed=int((Bp * G * D + Bp * G + Bp * Dop) * itemsize
                               + (D * Dop + Dop) * w_itemsize),
        )
        out = pl.pallas_call(
            _mean_pool_mlp_kernel,
            out_shape=jax.ShapeDtypeStruct((Bp, Dop), x.dtype),
            grid_spec=pltpu.PrefetchScalarGridSpec(
                num_scalar_prefetch=0,
                grid=grid,
                in_specs=[
                    pl.BlockSpec((TB * G, D), lambda b: (b, 0)),
                    pl.BlockSpec((TB, G, 1), lambda b: (b, 0, 0)),
                    pl.BlockSpec((D, Dop), lambda b: (0, 0)),
                    pl.BlockSpec((1, Dop), lambda b: (0, 0)),
                ],
                out_specs=pl.BlockSpec((TB, Dop), lambda b: (b, 0)),
            ),
            compiler_params=pltpu.CompilerParams(
                dimension_semantics=("parallel",),
                vmem_limit_bytes=_vmem_limit_bytes(
                    TB * live_row,
                    const_bytes=2 * (D * Dop + Dop) * w_itemsize),
            ),
            cost_estimate=cost,
        )(x2, mask3, wm, bm)
        return out[:B, :Do]

    # ---------------- no-MLP path ----------------
    Dp = _round_up(D, _LANE)                       # lane-dense loads/stores
    live_row = 2 * (G * Dp + G + Dp) * itemsize + 3 * G * Dp * 4
    TB = _choose_batch_tile(B, live_row)
    Bp = _round_up(B, TB)
    if Bp != B or Dp != D:
        x = jnp.pad(x, ((0, Bp - B), (0, 0), (0, Dp - D)))
    if Bp != B:
        mask = jnp.pad(mask, ((0, Bp - B), (0, 0)))
    mask3 = mask[..., None]

    grid = (Bp // TB,)
    cost = pl.CostEstimate(
        flops=int(3 * Bp * G * Dp),
        transcendentals=int(Bp * G + Bp),
        bytes_accessed=int((Bp * G * Dp + Bp * G + Bp * Dp) * itemsize),
    )
    out = pl.pallas_call(
        _mean_pool_kernel,
        out_shape=jax.ShapeDtypeStruct((Bp, Dp), x.dtype),
        grid_spec=pltpu.PrefetchScalarGridSpec(
            num_scalar_prefetch=0,
            grid=grid,
            in_specs=[
                pl.BlockSpec((TB, G, Dp), lambda b: (b, 0, 0)),
                pl.BlockSpec((TB, G, 1), lambda b: (b, 0, 0)),
            ],
            out_specs=pl.BlockSpec((TB, Dp), lambda b: (b, 0)),
        ),
        compiler_params=pltpu.CompilerParams(
            dimension_semantics=("parallel",),
            vmem_limit_bytes=_vmem_limit_bytes(TB * live_row),
        ),
        cost_estimate=cost,
    )(x, mask3)
    return out[:B, :D]


def init_params(key, input_dim, output_dim):
    """Deterministic init matching the PyTorch module's __init__."""
    # xavier_uniform_ for mlp[0].weight (stored transposed: [D, Do]), bias = 0.
    bound = (6.0 / (input_dim + output_dim)) ** 0.5
    w_mlp = jax.random.uniform(key, (input_dim, output_dim), jnp.float32,
                               -bound, bound)
    b_mlp = jnp.zeros((output_dim,), jnp.float32)
    return dict(w_mlp=w_mlp, b_mlp=b_mlp)


def reference(x, mask, params, mlp=False):
    """Pure-JAX reference of the PyTorch forward."""
    if mlp:
        h = jnp.tanh(jax.nn.relu(x @ params["w_mlp"] + params["b_mlp"]))
    else:
        h = x
    if mask is None:
        return jnp.mean(h, axis=1)
    w = jnp.exp(mask)
    return jnp.sum(h * w[:, :, None], axis=1) / jnp.sum(w, axis=1, keepdims=True)


if __name__ == "__main__":
    B, G, D, Do = 16, 8, 32, 32
    key = jax.random.PRNGKey(0)
    kx, km, kp = jax.random.split(key, 3)

    x = jax.random.normal(kx, (B, G, D), jnp.float32)
    # mask: -inf for absent members, 0 for present (keep at least one present)
    present = jax.random.bernoulli(km, 0.75, (B, G)).at[:, 0].set(True)
    mask = jnp.where(present, 0.0, -jnp.inf).astype(jnp.float32)

    params = init_params(kp, D, Do)

    out_mlp = mean_pool_aggregator(x, mask, params, mlp=True)
    out_plain = mean_pool_aggregator(x, mask, params, mlp=False)
    out_nomask = mean_pool_aggregator(x, None, params, mlp=False)
    jax.block_until_ready((out_mlp, out_plain, out_nomask))

    ref_mlp = reference(x, mask, params, mlp=True)
    ref_plain = reference(x, mask, params, mlp=False)
    ref_nomask = reference(x, None, params, mlp=False)

    assert out_mlp.shape == (B, Do) and out_plain.shape == (B, D)
    # Tolerance 1e-3 accounts for the EUP approximate reciprocal.
    assert jnp.allclose(out_mlp, ref_mlp, atol=1e-3, rtol=1e-3), \
        float(jnp.max(jnp.abs(out_mlp - ref_mlp)))
    assert jnp.allclose(out_plain, ref_plain, atol=1e-3, rtol=1e-3), \
        float(jnp.max(jnp.abs(out_plain - ref_plain)))
    assert jnp.allclose(out_nomask, ref_nomask, atol=1e-3, rtol=1e-3), \
        float(jnp.max(jnp.abs(out_nomask - ref_nomask)))

    print("KERNEL_OK")
</pallas_src>

<mosaic_0001>
module attributes {stable_mosaic.version = 11 : i64} {
  func.func @_mean_pool_mlp_kernel(%arg0: i32, %arg1: memref<64x32xf32, #tpu.memory_space<vmem>>, %arg2: memref<8x8x1xf32, #tpu.memory_space<vmem>>, %arg3: memref<32x128xf32, #tpu.memory_space<vmem>>, %arg4: memref<1x128xf32, #tpu.memory_space<vmem>>, %arg5: memref<8x128xf32, #tpu.memory_space<vmem>>) attributes {dimension_semantics = [#tpu.dimension_semantics<parallel>], iteration_bounds = array<i64: 2>, scalar_prefetch = 0 : i64, scratch_operands = 0 : i64, tpu.core_type = #tpu.core_type<tc>, window_params = [{transform_indices = @transform_0, window_bounds = array<i64: 64, 32>}, {transform_indices = @transform_1, window_bounds = array<i64: 8, 8, 1>}, {pipeline_mode = #tpu.pipeline_mode<synchronous>, transform_indices = @transform_2, window_bounds = array<i64: 32, 128>}, {pipeline_mode = #tpu.pipeline_mode<synchronous>, transform_indices = @transform_3, window_bounds = array<i64: 1, 128>}, {transform_indices = @transform_4, window_bounds = array<i64: 8, 128>}]} {
    %c0 = arith.constant 0 : index
    %c0_0 = arith.constant 0 : index
    %0 = vector.load %arg1[%c0, %c0_0] : memref<64x32xf32, #tpu.memory_space<vmem>>, vector<64x32xf32>
    %c0_1 = arith.constant 0 : index
    %c0_2 = arith.constant 0 : index
    %1 = vector.load %arg3[%c0_1, %c0_2] : memref<32x128xf32, #tpu.memory_space<vmem>>, vector<32x128xf32>
    %cst = arith.constant dense<0.000000e+00> : vector<64x128xf32>
    %2 = tpu.matmul %0, %1, %cst {dimension_numbers = #tpu.dot_dimension_numbers<[1], [0], [0], [1], [0, 0, 1, 1], [], []>} : vector<64x32xf32>, vector<32x128xf32>, vector<64x128xf32> -> vector<64x128xf32>
    %c0_3 = arith.constant 0 : index
    %c0_4 = arith.constant 0 : index
    %3 = vector.load %arg4[%c0_3, %c0_4] : memref<1x128xf32, #tpu.memory_space<vmem>>, vector<1x128xf32>
    %4 = vector.broadcast %3 : vector<1x128xf32> to vector<64x128xf32>
    %5 = arith.addf %2, %4 : vector<64x128xf32>
    %cst_5 = arith.constant 0.000000e+00 : f32
    %6 = vector.broadcast %cst_5 : f32 to vector<64x128xf32>
    %7 = arith.maximumf %5, %6 : vector<64x128xf32>
    %8 = math.tanh %7 : vector<64x128xf32>
    %9 = vector.shape_cast %8 : vector<64x128xf32> to vector<8x8x128xf32>
    %c0_6 = arith.constant 0 : index
    %c0_7 = arith.constant 0 : index
    %c0_8 = arith.constant 0 : index
    %10 = vector.load %arg2[%c0_6, %c0_7, %c0_8] : memref<8x8x1xf32, #tpu.memory_space<vmem>>, vector<8x8x1xf32>
    %11 = math.exp %10 : vector<8x8x1xf32>
    %12 = vector.broadcast %11 : vector<8x8x1xf32> to vector<8x8x128xf32>
    %13 = arith.mulf %9, %12 : vector<8x8x128xf32>
    %cst_9 = arith.constant dense<0.000000e+00> : vector<8x128xf32>
    %14 = vector.multi_reduction <add>, %13, %cst_9 [1] : vector<8x8x128xf32> to vector<8x128xf32>
    %cst_10 = arith.constant dense<0.000000e+00> : vector<8x1xf32>
    %15 = vector.multi_reduction <add>, %11, %cst_10 [1] : vector<8x8x1xf32> to vector<8x1xf32>
    %16 = tpu.reciprocal %15 {approx = true} : vector<8x1xf32> -> vector<8x1xf32>
    %17 = vector.broadcast %16 : vector<8x1xf32> to vector<8x128xf32>
    %18 = arith.mulf %14, %17 : vector<8x128xf32>
    %c0_11 = arith.constant 0 : index
    %c0_12 = arith.constant 0 : index
    %19 = vector.load %arg5[%c0_11, %c0_12] : memref<8x128xf32, #tpu.memory_space<vmem>>, vector<8x128xf32>
    tpu.vector_store %arg5[%c0_11, %c0_12], %18 {strides = array<i32>} : memref<8x128xf32, #tpu.memory_space<vmem>>, vector<8x128xf32>,
    return
  }
  func.func @transform_0(%arg0: i32) -> (i32, i32) {
    %c0_i32 = arith.constant 0 : i32
    %c0_i32_0 = arith.constant 0 : i32
    return %arg0, %c0_i32 : i32, i32
  }
  func.func @transform_1(%arg0: i32) -> (i32, i32, i32) {
    %c0_i32 = arith.constant 0 : i32
    %c0_i32_0 = arith.constant 0 : i32
    %c0_i32_1 = arith.constant 0 : i32
    return %arg0, %c0_i32, %c0_i32_0 : i32, i32, i32
  }
  func.func @transform_2(%arg0: i32) -> (i32, i32) {
    %c0_i32 = arith.constant 0 : i32
    %c0_i32_0 = arith.constant 0 : i32
    %c0_i32_1 = arith.constant 0 : i32
    return %c0_i32, %c0_i32_0 : i32, i32
  }
  func.func @transform_3(%arg0: i32) -> (i32, i32) {
    %c0_i32 = arith.constant 0 : i32
    %c0_i32_0 = arith.constant 0 : i32
    %c0_i32_1 = arith.constant 0 : i32
    return %c0_i32, %c0_i32_0 : i32, i32
  }
  func.func @transform_4(%arg0: i32) -> (i32, i32) {
    %c0_i32 = arith.constant 0 : i32
    %c0_i32_0 = arith.constant 0 : i32
    return %arg0, %c0_i32 : i32, i32
  }
}

</mosaic_0001>

<bundles_post_ra>
// kernel: tpu_custom_call.1
= control target key start
LH: loop header
LB: loop body
LE: loop exit
PB: predicated region body
PF: predicated region fallthrough
CT: control target
= control target key end

     0   :  { %9 = vsyncpa [#allocation3], 0  ;;  %s1022_s0 = inlined_call_operand.vmem [shape: f32[128,32], index: 0, kind: input, shape index: {}]   ;;  %s1023_s1 = inlined_call_operand.vmem [shape: f32[16,8,1], index: 1, kind: input, shape index: {}]   ;;  %s1024_s2 = inlined_call_operand.vmem [shape: f32[32,128], index: 2, kind: input, shape index: {}]   ;;  %s1025_s3 = inlined_call_operand.vmem [shape: f32[1,128], index: 3, kind: input, shape index: {}]   ;;  %s1026_s4 = inlined_call_operand.hbm [shape: f32[16,128], index: 4, kind: output, shape index: {}]  }
   0x1   :  { %11 = vsyncpa [#allocation3 + $0x1], 0  ;;  %s877_s15 = smov 0   ;;  %s879_s16 = smov 0  }
   0x2   :  { %s881_s17 = smov 0   ;;  %s883_s18 = smov 0  }
   0x3 LB: > { %s661_s19 = sadd.s32 4294967295, %s849_s18   ;;  %s662_s20 = sadd.s32 4294967294, %s849_s18   ;;  %s849_s18 = sphi %s883_s18, %s1032_s18   ;;  %s845_s17 = sphi %s881_s17, %s1031_s17   ;;  %s841_s16 = sphi %s879_s16, %s1030_s16   ;;  %s837_s15 = sphi %s877_s15, %s1029_s15  }
   0x4   : > { %s900_s21 = sadd.s32 1, %s849_s18   ;;  %s118_s22 = sadd.s32 1, %s845_s17 }
   0x5   : > { %s115_s23 = ssub.s32 %s849_s18, %s900_s21  ;;  %p128_p0 = scmp.ne.s32.totalorder %s845_s17, %s841_s16 }
   0x6   : > { %p116_p1 = scmp.eq.s32.totalorder %s115_s23, 0  ;;  %p129_p2 = scmp.eq.s32.totalorder %s661_s19, 1 }
   0x7   : > { %p134_p3 = scmp.ne.s32.totalorder %s841_s16, %s837_s15  ;;  %p135_p4 = scmp.eq.s32.totalorder %s662_s20, 1 }
   0x8   : > { %s910_s24 = scalar_select %p116_p1, %s845_s17, %s118_s22  }
   0x9   : > { %p912_p5 = por %p129_p2, %p128_p0  ;;  %p916_p6 = por %p135_p4, %p134_p3 }
   0xa   : > { %p665_p7 = scmp.ge.s32.totalorder %s849_s18, 1  ;;  %p177_p8 = scmp.lt.s32.totalorder %s849_s18, 3 }
   0xc   : > { %p178_p9 = pnand %p665_p7, %p177_p8 }
   0xd   : > { %s928_s5 = sshll.u32 (!%p178_p9), %s661_s19, 3  ;;  %s205_s28 = sand.u32 (!%p178_p9), 1, %s841_s16  }
   0xe   : > { %181 = sbr.rel (%p178_p9) target bundleno = 202 (0xca), region = 36  ;;  %p209_p10 = scmp.lt.s32.totalorder (!%p178_p9), %s928_s5, 15 }
   0xf   : > { %s986_s29 = sshll.u32 (!%p178_p9), %s205_s28, 3  ;;  %s586_s7 = scalar_lea.hbm (!%p178_p9), %s1026_s4, %s928_s5 }
  0x10   : > { %s590_s10 = sshll.u32 (!%p178_p9), %s586_s7, 4  ;;  %s807_s19 = scalar_lea.hbm (!%p178_p9), %s1026_s4, 16  ;;  %s591_s10 = int_to_ptr.hbm [resolvable:$true] %s590_s10 }
  0x13   : > { %v231_v0 = vld [vmem:[%s1024_s2 + $0x18] sm:$0xff]  ;;  %v230_v1 = vld [vmem:[%s1024_s2 + $0x10] sm:$0xff]  ;;  %v229_v2 = vld [vmem:[%s1024_s2 + $0x8] sm:$0xff]  ;;  %s210_s8 = scalar_select %p209_p10, %s928_s5, 15  ;;  %vm236_vm0 = vcmask 261120   ;;  %v851_v13 = vmov 0  }
  0x14   : > { %273 = vmatpush.msra.mxu0 %v231_v0  ;;  %683 = vmatpush.msra.mxu1 %v231_v0  ;;  %v228_v3 = vld [vmem:[%s1024_s2] sm:$0xff]  ;;  %vm438_vm1 = vcmask 7168   ;;  %vm559_vm2 = vcmask 1041409   ;;  %vm561_vm3 = vcmask 1042434   ;;  %vm563_vm4 = vcmask 1043459   ;;  %s576_s5 = scalar_lea.sflag [#allocation3], %s205_s28 }
  0x15   : > { %684 = vmatpush.msra.mxu2 %v231_v0  ;;  %685 = vmatpush.msra.mxu3 %v231_v0  ;;  %s668_s11 = sshll.u32 %s210_s8, 3  ;;  %vm565_vm5 = vcmask 1044484   ;;  %vm567_vm6 = vcmask 1045509   ;;  %vm569_vm7 = vcmask 1046534   ;;  %s207_s8 = scalar_lea.vmem [#allocation2], %s986_s29  ;;  %vm571_vm8 = vcmask 1047559  }
  0x16   : > { %274 = vmatpush.msra.mxu0 %v230_v1  ;;  %686 = vmatpush.msra.mxu1 %v230_v1  ;;  %s941_s14 = scalar_lea.vmem %s1022_s0, %s668_s11  ;;  %s946_s22 = scalar_lea.vmem %s1023_s1, %s668_s11 }
  0x17   : > { %687 = vmatpush.msra.mxu2 %v230_v1  ;;  %688 = vmatpush.msra.mxu3 %v230_v1  ;;  %v220_v4 = vld [vmem:[%s941_s14] sm:$0xff]  ;;  %v222_v5 = vld [vmem:[%s941_s14 + $0x10] sm:$0xff]  ;;  %v321_v12 = vld [vmem:[%s946_s22 + $0x18] sm:$0xff]  ;;  %s588_s9 = sshll.u32 %s207_s8, 4  ;;  %s801_s11 = sshra.s32 %s591_s10, 4  ;;  %s589_s9 = int_to_ptr.vmem [resolvable:$true] %s588_s9  ;;  %s802_s11 = int_to_ptr.hbm [resolvable:$true] %s801_s11 }
  0x18   : > { %275 = vmatpush.msra.mxu0 %v229_v2  ;;  %689 = vmatpush.msra.mxu1 %v229_v2  ;;  %v224_v6 = vld [vmem:[%s941_s14 + $0x20] sm:$0xff]  ;;  %v226_v7 = vld [vmem:[%s941_s14 + $0x30] sm:$0xff]  ;;  %v332_v16 = vmul.f32 1.442695, %v321_v12  ;;  %v319_v17 = vld [vmem:[%s946_s22 + $0x8] sm:$0xff]  ;;  %s803_s12 = scalar_lea.hbm %s802_s11, 8  ;;  %p808_p0 = scmp.lt.s32.totalorder %s802_s11, %s1026_s4 }
  0x19   : > { %690 = vmatpush.msra.mxu2 %v229_v2  ;;  %691 = vmatpush.msra.mxu3 %v229_v2  ;;  %v320_v8 = vld [vmem:[%s946_s22 + $0x10] sm:$0xff]  ;;  %v318_v10 = vld [vmem:[%s946_s22] sm:$0xff]  ;;  %v323_v18 = vld [vmem:[%s946_s22 + $0x28] sm:$0xff]  ;;  %v328_v20 = vmul.f32 1.442695, %v319_v17  ;;  %p804_p11 = scmp.ne.s32.totalorder %s802_s11, %s803_s12  ;;  %p809_p1 = scmp.lt.s32.totalorder %s807_s19, %s803_s12 }
  0x1a   : > { %276 = vmatpush.msra.mxu0 %v228_v3  ;;  %692 = vmatpush.msra.mxu1 %v228_v3  ;;  %v330_v9 = vmul.f32 1.442695, %v320_v8  ;;  %v322_v11 = vld [vmem:[%s946_s22 + $0x20] sm:$0xff]  ;;  %v326_v14 = vmul.f32 1.442695, %v318_v10  ;;  %v325_v19 = vld [vmem:[%s946_s22 + $0x38] sm:$0xff] }
  0x1b   : > { %693 = vmatpush.msra.mxu2 %v228_v3  ;;  %694 = vmatpush.msra.mxu3 %v228_v3  ;;  %v334_v15 = vmul.f32 1.442695, %v322_v11  ;;  %v336_v21 = vmul.f32 1.442695, %v323_v18  ;;  %v221_v22 = vld [vmem:[%s941_s14 + $0x8] sm:$0xff]  ;;  %v223_v23 = vld [vmem:[%s941_s14 + $0x18] sm:$0xff]  ;;  %p805_p12 = pnand %p804_p11, %p912_p5  ;;  %p810_p2 = por %p809_p1, %p808_p0 }
  0x1c   : > { %671 = vmatmul.msk.f32.vlgmr.msra.gmra.mxu0 %vm236_vm0, %v220_v4  ;;  %673 = vmatmul.msk.f32.vlgmr.msra.gmra.mxu1 %vm236_vm0, %v222_v5  ;;  %739 = vpow2.f32 %v330_v9  ;;  %v340_v24 = vmul.f32 1.442695, %v325_v19  ;;  %v324_v25 = vld [vmem:[%s946_s22 + $0x30] sm:$0xff]  ;;  %v225_v26 = vld [vmem:[%s941_s14 + $0x28] sm:$0xff]  ;;  %v227_v27 = vld [vmem:[%s941_s14 + $0x38] sm:$0xff] }
  0x1d   : > { %675 = vmatmul.msk.f32.vlgmr.msra.gmra.mxu2 %vm236_vm0, %v224_v6  ;;  %677 = vmatmul.msk.f32.vlgmr.msra.gmra.mxu3 %vm236_vm0, %v226_v7  ;;  %741 = vpow2.f32 %v326_v14  ;;  %v338_v28 = vmul.f32 1.442695, %v324_v25  ;;  %p806_p13 = pneg %p805_p12 }
  0x1e   : > { %736 = vset.pattern.permute.xlu1 %v851_v13  ;;  %735 = vset.pattern.permute.xlu0 %v851_v13  ;;  %743 = vpow2.f32 %v334_v15 }
  0x1f   : > { %737 = vset.pattern.permute.xlu2 %v851_v13  ;;  %745 = vpow2.f32 %v332_v16  ;;  %p811_p3 = pnand %p810_p2, %p806_p13 }
  0x20   : > { %747 = vpow2.f32 %v328_v20 }
  0x21   : > { %749 = vpow2.f32 %v336_v21 }
  0x22   : > { %v740_v29 = vpop.eup %739  ;;  %751 = vpow2.f32 %v340_v24 }
  0x23   : > { %v742_v30 = vpop.eup %741  ;;  %354 = vperm.xlu1 %736, %v740_v29   ;;  %v453_v31 = vsel %vm438_vm1, %v740_v29, 0.0  ;;  %753 = vpow2.f32 %v338_v28 }
  0x24   : > { %672 = vmatmul.msk.f32.gmra.mxu0 %vm236_vm0, %v221_v22  ;;  %674 = vmatmul.msk.f32.gmra.mxu1 %vm236_vm0, %v223_v23  ;;  %v744_v32 = vpop.eup %743  ;;  %v454_v33 = vrot.slane %v453_v31, 4  ;;  %v439_v34 = vsel %vm438_vm1, %v742_v30, 0.0 }
  0x25   : > { %676 = vmatmul.msk.f32.gmra.mxu2 %vm236_vm0, %v225_v26  ;;  %678 = vmatmul.msk.f32.gmra.mxu3 %vm236_vm0, %v227_v27  ;;  %v746_v35 = vpop.eup %745  ;;  %v440_v36 = vrot.slane %v439_v34, 4  ;;  %v467_v37 = vsel %vm438_vm1, %v744_v32, 0.0 }
  0x26   : > { %344 = vperm.xlu0 %735, %v742_v30   ;;  %364 = vperm.xlu2 %737, %v744_v32   ;;  %v748_v38 = vpop.eup %747  ;;  %v455_v39 = vadd.f32 %v454_v33, %v453_v31  ;;  %v468_v40 = vrot.slane %v467_v37, 4  ;;  %v460_v41 = vsel %vm438_vm1, %v746_v35, 0.0 }
  0x27   : > { %v750_v42 = vpop.eup %749  ;;  %v441_v43 = vadd.f32 %v440_v36, %v439_v34  ;;  %v446_v44 = vsel %vm438_vm1, %v748_v38, 0.0  ;;  %v461_v45 = vrot.slane %v460_v41, 4 }
  0x28   : > { %v752_v46 = vpop.eup %751  ;;  %v456_v47 = vrot.slane %v455_v39, 2  ;;  %v469_v48 = vadd.f32 %v468_v40, %v467_v37  ;;  %v447_v49 = vrot.slane %v446_v44, 4  ;;  %v474_v50 = vsel %vm438_vm1, %v750_v42, 0.0  ;;  %v738_v37 = vld [vmem:[%s1025_s3] ss:$0 sm:$0xff] }
  0x29   : > { %v754_v51 = vpop.eup %753  ;;  %v442_v52 = vrot.slane %v441_v43, 2  ;;  %v462_v53 = vadd.f32 %v461_v45, %v460_v41  ;;  %v475_v54 = vrot.slane %v474_v50, 4  ;;  %v488_v55 = vsel %vm438_vm1, %v752_v46, 0.0 }
  0x2a   : > { %v457_v56 = vadd.f32 %v456_v47, %v455_v39  ;;  %v470_v57 = vrot.slane %v469_v48, 2  ;;  %v448_v58 = vadd.f32 %v447_v49, %v446_v44  ;;  %v481_v59 = vsel %vm438_vm1, %v754_v51, 0.0 }
  0x2b   : > { %v443_v60 = vadd.f32 %v442_v52, %v441_v43  ;;  %359 = vperm.xlu1 %736, %v746_v35   ;;  %v463_v61 = vrot.slane %v462_v53, 2  ;;  %v476_v62 = vadd.f32 %v475_v54, %v474_v50  ;;  %v482_v63 = vrot.slane %v481_v59, 4 }
  0x2c   : > { %v458_v0 = vrot.slane %v457_v56, 1  ;;  %v449_v1 = vrot.slane %v448_v58, 2  ;;  %v489_v2 = vrot.slane %v488_v55, 4  ;;  %v471_v7 = vadd.f32 %v470_v57, %v469_v48 }
  0x2d   : > { %v444_v3 = vrot.slane %v443_v60, 1  ;;  %v464_v4 = vadd.f32 %v463_v61, %v462_v53  ;;  %v477_v5 = vrot.slane %v476_v62, 2  ;;  %v483_v6 = vadd.f32 %v482_v63, %v481_v59 }
  0x2e   : > { %349 = vperm.xlu0 %735, %v748_v38   ;;  %369 = vperm.xlu2 %737, %v750_v42   ;;  %v459_v8 = vadd.f32 %v458_v0, %v457_v56  ;;  %v450_v9 = vadd.f32 %v449_v1, %v448_v58  ;;  %v490_v10 = vadd.f32 %v489_v2, %v488_v55  ;;  %v472_v19 = vrot.slane %v471_v7, 1 }
  0x2f   : > { %v445_v11 = vadd.f32 %v444_v3, %v443_v60  ;;  %v465_v12 = vrot.slane %v464_v4, 1  ;;  %v478_v13 = vadd.f32 %v477_v5, %v476_v62  ;;  %v484_v14 = vrot.slane %v483_v6, 2 }
  0x30   : > { %v451_v15 = vrot.slane %v450_v9, 1  ;;  %v491_v21 = vrot.slane %v490_v10, 2  ;;  %v473_v24 = vadd.f32 %v472_v19, %v471_v7 }
  0x31   : > { %755 = vrcp.f32 %v445_v11  ;;  %v479_v17 = vrot.slane %v478_v13, 1  ;;  %v466_v18 = vadd.f32 %v465_v12, %v464_v4  ;;  %v485_v20 = vadd.f32 %v484_v14, %v483_v6 }
  0x32   : > { %757 = vrcp.f32 %v459_v8  ;;  %v452_v16 = vadd.f32 %v451_v15, %v450_v9  ;;  %v492_v26 = vadd.f32 %v491_v21, %v490_v10 }
  0x33   : > { %379 = vperm.xlu1 %736, %v752_v46   ;;  %v480_v22 = vadd.f32 %v479_v17, %v478_v13  ;;  %v486_v25 = vrot.slane %v485_v20, 1 }
  0x34   : > { %759 = vrcp.f32 %v452_v16  ;;  %v493_v30 = vrot.slane %v492_v26, 1 }
  0x35   : > { %761 = vrcp.f32 %v466_v18  ;;  %v487_v29 = vadd.f32 %v486_v25, %v485_v20 }
  0x36   : > { %374 = vperm.xlu0 %735, %v754_v51   ;;  %763 = vrcp.f32 %v480_v22  ;;  %v494_v32 = vadd.f32 %v493_v30, %v492_v26 }
  0x37   : > { %v756_v23 = vpop.eup %755  ;;  %765 = vrcp.f32 %v473_v24 }
  0x38   : > { %v758_v27 = vpop.eup %757  ;;  %505 = vperm.xlu2 %737, %v756_v23   ;;  %767 = vrcp.f32 %v487_v29 }
  0x39   : > { %769 = vrcp.f32 %v494_v32 }
  0x3a   : > { %v760_v28 = vpop.eup %759 }
  0x3b   : > { %515 = vperm.xlu1 %736, %v758_v27   ;;  %v762_v31 = vpop.eup %761 }
  0x3c   : > { %v764_v33 = vpop.eup %763 }
  0x3d   : > { %v766_v34 = vpop.eup %765 }
  0x3e   : > { %510 = vperm.xlu0 %735, %v760_v28   ;;  %v768_v35 = vpop.eup %767 }
  0x3f   : > { %v770_v36 = vpop.eup %769 }
  0x40   : > { %520 = vperm.xlu2 %737, %v762_v31  }
  0x43   : > { %530 = vperm.xlu1 %736, %v764_v33  }
  0x46   : > { %525 = vperm.xlu0 %735, %v766_v34  }
  0x48   : > { %535 = vperm.xlu2 %737, %v768_v35  }
  0x4e   : > { %540 = vperm.xlu0 %735, %v770_v36  }
  0x80   : > { %v365_v41 = vpop.permute.xlu2 %364 }
  0x88   : > { %v370_v59 = vpop.permute.xlu2 %369 }
  0x92   : > { %v506_v22 = vpop.permute.xlu2 %505 }
  0x95   : > { %v355_v38 = vpop.permute.xlu1 %354 }
  0x98   : > { %v345_v39 = vpop.permute.xlu0 %344 }
  0x99   : > { %v278_v40 = vpop.f32.mrf.mxu0  ;;  %v284_v43 = vpop.f32.mrf.mxu1 }
  0x9a   : > { %v279_v42 = vadd.f32 %v738_v37, %v278_v40  ;;  %v285_v44 = vadd.f32 %v738_v37, %v284_v43 }
  0x9c   : > { %v302_v45 = vmax.f32 %v279_v42, 0.0  ;;  %v304_v46 = vmax.f32 %v285_v44, 0.0 }
  0x9d   : > { %v360_v54 = vpop.permute.xlu1 %359 }
  0x9e   : > { %771 = vtanh.f32 %v302_v45 }
  0x9f   : > { %773 = vtanh.f32 %v304_v46 }
  0xa0   : > { %v290_v47 = vpop.f32.mrf.mxu2  ;;  %v350_v48 = vpop.permute.xlu0 %349 }
  0xa1   : > { %v291_v49 = vadd.f32 %v738_v37, %v290_v47  ;;  %v296_v50 = vpop.f32.mrf.mxu3  ;;  %v281_v52 = vpop.f32.mrf.mxu0 }
  0xa2   : > { %v297_v51 = vadd.f32 %v738_v37, %v296_v50  ;;  %v287_v53 = vpop.f32.mrf.mxu1  ;;  %v282_v56 = vadd.f32 %v738_v37, %v281_v52 }
  0xa3   : > { %v306_v55 = vmax.f32 %v291_v49, 0.0  ;;  %v288_v57 = vadd.f32 %v738_v37, %v287_v53  ;;  %v521_v53 = vpop.permute.xlu2 %520 }
  0xa4   : > { %v772_v58 = vpop.eup %771  ;;  %v308_v60 = vmax.f32 %v297_v51, 0.0  ;;  %v303_v63 = vmax.f32 %v282_v56, 0.0 }
  0xa5   : > { %v774_v61 = vpop.eup %773  ;;  %v382_v62 = vmul.f32 %v772_v58, %v345_v39  ;;  %775 = vtanh.f32 %v306_v55  ;;  %v305_v0 = vmax.f32 %v288_v57, 0.0  ;;  %v380_v18 = vpop.permute.xlu1 %379 }
  0xa6   : > { %777 = vtanh.f32 %v308_v60  ;;  %v384_v1 = vmul.f32 %v774_v61, %v355_v38 }
  0xa7   : > { %v390_v2 = vrot.slane %v382_v62, 4  ;;  %779 = vtanh.f32 %v303_v63 }
  0xa8   : > { %781 = vtanh.f32 %v305_v0  ;;  %v293_v3 = vpop.f32.mrf.mxu2  ;;  %v402_v4 = vrot.slane %v384_v1, 4  ;;  %v375_v6 = vpop.permute.xlu0 %374 }
  0xa9   : > { %v391_v5 = vadd.f32 %v390_v2, %v382_v62  ;;  %v294_v7 = vadd.f32 %v738_v37, %v293_v3  ;;  %v299_v8 = vpop.f32.mrf.mxu3 }
  0xaa   : > { %v300_v9 = vadd.f32 %v738_v37, %v299_v8  ;;  %v403_v10 = vadd.f32 %v402_v4, %v384_v1 }
  0xab   : > { %v776_v11 = vpop.eup %775  ;;  %v307_v12 = vmax.f32 %v294_v7, 0.0  ;;  %v392_v14 = vrot.slane %v391_v5, 2 }
  0xac   : > { %v778_v13 = vpop.eup %777  ;;  %v309_v15 = vmax.f32 %v300_v9, 0.0  ;;  %v386_v16 = vmul.f32 %v776_v11, %v365_v41  ;;  %v404_v20 = vrot.slane %v403_v10, 2 }
  0xad   : > { %v780_v17 = vpop.eup %779  ;;  %v388_v19 = vmul.f32 %v778_v13, %v375_v6  ;;  %783 = vtanh.f32 %v307_v12  ;;  %v393_v27 = vadd.f32 %v392_v14, %v391_v5  ;;  %v516_v51 = vpop.permute.xlu1 %515 }
  0xae   : > { %v782_v21 = vpop.eup %781  ;;  %785 = vtanh.f32 %v309_v15  ;;  %v383_v23 = vmul.f32 %v780_v17, %v350_v48  ;;  %v414_v24 = vrot.slane %v386_v16, 4  ;;  %v405_v32 = vadd.f32 %v404_v20, %v403_v10 }
  0xaf   : > { %v385_v25 = vmul.f32 %v782_v21, %v360_v54  ;;  %v426_v26 = vrot.slane %v388_v19, 4  ;;  %v394_v40 = vrot.slane %v393_v27, 1  ;;  %v536_v21 = vpop.permute.xlu2 %535 }
  0xb0   : > { %v396_v28 = vrot.slane %v383_v23, 4  ;;  %v415_v29 = vadd.f32 %v414_v24, %v386_v16  ;;  %v511_v33 = vpop.permute.xlu0 %510  ;;  %v406_v44 = vrot.slane %v405_v32, 1 }
  0xb1   : > { %v408_v30 = vrot.slane %v385_v25, 4  ;;  %v427_v31 = vadd.f32 %v426_v26, %v388_v19  ;;  %v395_v54 = vadd.f32 %v394_v40, %v393_v27 }
  0xb2   : > { %v397_v34 = vadd.f32 %v396_v28, %v383_v23  ;;  %v416_v35 = vrot.slane %v415_v29, 2  ;;  %v407_v58 = vadd.f32 %v406_v44, %v405_v32 }
  0xb3   : > { %v784_v36 = vpop.eup %783  ;;  %v409_v37 = vadd.f32 %v408_v30, %v385_v25  ;;  %v428_v38 = vrot.slane %v427_v31, 2  ;;  %v543_v3 = vmul.f32 %v506_v22, %v395_v54 }
  0xb4   : > { %v786_v39 = vpop.eup %785  ;;  %v398_v41 = vrot.slane %v397_v34, 2  ;;  %v387_v42 = vmul.f32 %v784_v36, %v370_v59  ;;  %v417_v45 = vadd.f32 %v416_v35, %v415_v29  ;;  %v545_v6 = vmul.f32 %v516_v51, %v407_v58 }
  0xb5   : > { %v410_v43 = vrot.slane %v409_v37, 2  ;;  %v389_v46 = vmul.f32 %v786_v39, %v380_v18  ;;  %v429_v50 = vadd.f32 %v428_v38, %v427_v31  ;;  %v531_v17 = vpop.permute.xlu1 %530 }
  0xb6   : > { %v399_v47 = vadd.f32 %v398_v41, %v397_v34  ;;  %v420_v48 = vrot.slane %v387_v42, 4  ;;  %v418_v59 = vrot.slane %v417_v45, 1 }
  0xb7   : > { %v411_v49 = vadd.f32 %v410_v43, %v409_v37  ;;  %v432_v52 = vrot.slane %v389_v46, 4  ;;  %v430_v0 = vrot.slane %v429_v50, 1 }
  0xb8   : > { %v400_v55 = vrot.slane %v399_v47, 1  ;;  %v421_v56 = vadd.f32 %v420_v48, %v387_v42  ;;  %v526_v60 = vpop.permute.xlu0 %525  ;;  %v419_v7 = vadd.f32 %v418_v59, %v417_v45 }
  0xb9   : > { %v412_v57 = vrot.slane %v411_v49, 1  ;;  %v433_v61 = vadd.f32 %v432_v52, %v389_v46  ;;  %v431_v12 = vadd.f32 %v430_v0, %v429_v50 }
  0xba   : > { %v401_v62 = vadd.f32 %v400_v55, %v399_v47  ;;  %v422_v63 = vrot.slane %v421_v56, 2  ;;  %v547_v18 = vmul.f32 %v526_v60, %v419_v7 }
  0xbb   : > { %v413_v1 = vadd.f32 %v412_v57, %v411_v49  ;;  %v434_v2 = vrot.slane %v433_v61, 2  ;;  %v549_v23 = vmul.f32 %v536_v21, %v431_v12 }
  0xbc   : > { %v544_v4 = vmul.f32 %v511_v33, %v401_v62  ;;  %v423_v5 = vadd.f32 %v422_v63, %v421_v56 }
  0xbd   : > { %v435_v8 = vadd.f32 %v434_v2, %v433_v61  ;;  %v546_v11 = vmul.f32 %v521_v53, %v413_v1 }
  0xbe   : > { %v560_v9 = vsel %vm559_vm2, %v544_v4, %v543_v3  ;;  %v424_v10 = vrot.slane %v423_v5, 1 }
  0xbf   : > { %v562_v13 = vsel %vm561_vm3, %v545_v6, %v560_v9  ;;  %v436_v14 = vrot.slane %v435_v8, 1 }
  0xc0   : > { %v425_v15 = vadd.f32 %v424_v10, %v423_v5  ;;  %v564_v16 = vsel %vm563_vm4, %v546_v11, %v562_v13  ;;  %v541_v19 = vpop.permute.xlu0 %540 }
  0xc1   : > { %v437_v20 = vadd.f32 %v436_v14, %v435_v8  ;;  %v566_v24 = vsel %vm565_vm5, %v547_v18, %v564_v16 }
  0xc2   : > { %v548_v22 = vmul.f32 %v531_v17, %v425_v15 }
  0xc3   : > { %v550_v26 = vmul.f32 %v541_v19, %v437_v20 }
  0xc4   : > { %v568_v25 = vsel %vm567_vm6, %v548_v22, %v566_v24 }
  0xc5   : > { %v570_v27 = vsel %vm569_vm7, %v549_v23, %v568_v25 }
  0xc6   : > { %v572_v28 = vsel %vm571_vm8, %v550_v26, %v570_v27 }
  0xc7   : > { %574 = vst [vmem:[%s207_s8] sm:$0xff] %v572_v28 }
  0xc8   : > { %814 = shalt.err (!%p811_p3)
}
  0xc9   : > { %695 = dma.vmem_to_hbm [thread:$0]  (%p912_p5), %s589_s9, 128, %s591_s10, %s576_s5  }
  0xca PF: > { %p701_p4 = scmp.ge.s32.totalorder %s849_s18, 2  ;;  %s602_s23 = sand.u32 1, %s837_s15  }
  0xcb   : > { %s603_s27 = scalar_lea.sflag [#allocation3], %s602_s23 }
  0xcc   : > { %p698_p7 = pnand %p701_p4, %p916_p6 }
  0xce   : > { %p699_p8 = pneg %p698_p7 }
  0xd0   : > { %832 = dma.done.wait (%p699_p8), %s603_s27, 128  }
  0xd1   : > { %834 = vsyncadd (%p699_p8), %s603_s27, 4294967168  ;;  %p14_p9 = scmp.ge.s32.totalorder %s900_s21, 4   ;;  %s1029_s15 = smov %s841_s16 }
  0xd2   : > { %s1030_s16 = smov %s845_s17  ;;  %s1031_s17 = smov %s910_s24 }
  0xd3   : > { %s1032_s18 = smov %s900_s21  ;;  %16 = sbr.rel (!%p14_p9) target bundleno = 3 (0x3), region = 74 }
  0xd8   :  { %609 = vsyncpa [#allocation3], 1 }
  0xd9   :  { %611 = vsyncpa [#allocation3 + $0x1], 1 }

</bundles_post_ra>
